<compile_context>
chip_gen: v7x
topology: tpu7x:2x2x1
jax: 0.10.0
libtpu: 0.0.40
codegen_flags: <defaults>
</compile_context>

<pallas_src>
import math

import jax
import jax.numpy as jnp
from jax.experimental import pallas as pl
from jax.experimental.pallas import tpu as pltpu

_LANE = 128
_SUBLANE = 8


def _round_up(x: int, m: int) -> int:
    return ((x + m - 1) // m) * m


def _cdiv(a: int, b: int) -> int:
    return (a + b - 1) // b


def _initial_params(cutoff_lower: float, cutoff_upper: float, num_rbf: int):
    """Deterministic parameter init identical to the PyTorch module."""
    start_value = math.exp(-cutoff_upper + cutoff_lower)
    means = jnp.linspace(start_value, 1.0, num_rbf, dtype=jnp.float32)
    betas = jnp.full(
        (num_rbf,), (2.0 / num_rbf * (1.0 - start_value)) ** (-2), dtype=jnp.float32
    )
    return means, betas


def _make_kernel(fuse_inner_exp: bool, alpha: float, cutoff_lower: float,
                 exp_in_bf16: bool):
    """Build the kernel body; the booleans are compile-time (Python) flags."""

    def kernel(x_ref, means_ref, nbetas_ref, out_ref):
        # x_ref:      (tile, 1)       f32  (dist if fuse_inner_exp else precomputed e)
        # means_ref:  (1, num_rbf)    f32
        # nbetas_ref: (1, num_rbf)    f32  (already negated: -betas)
        # out_ref:    (tile, num_rbf) out_dtype
        x = x_ref[...]
        if fuse_inner_exp:
            e = jnp.exp(alpha * (cutoff_lower - x))          # EUP, per-row
        else:
            e = x                                            # precomputed in wrapper
        diff = e - means_ref[...]                            # broadcast -> (tile, R), VPU
        arg = nbetas_ref[...] * diff * diff                  # VPU
        if exp_in_bf16:
            # v6e/v7x only: bf16 vreg packs 16 rows -> half the EUP pushes.
            val = jnp.exp(arg.astype(jnp.bfloat16))
        else:
            val = jnp.exp(arg)                               # EUP, f32
        out_ref[...] = val.astype(out_ref.dtype)

    return kernel


def exp_normal_smearing(
    dist: jax.Array,
    means: jax.Array,
    betas: jax.Array,
    *,
    cutoff_lower: float = 0.0,
    cutoff_upper: float = 10.0,
    tile_n: int = 8192,
    out_dtype=jnp.float32,
    fuse_inner_exp: bool = False,
    exp_in_bf16: bool = False,
) -> jax.Array:
    """dist: (N,) -> (N, num_rbf).

    tile_n: max rows per grid step (rounded so padding waste is <= 7 rows per
    tile).  Sweep per generation: ~8K-16K (v5e), ~16K-24K (v6e), ~8K-12K (v7x,
    keep the double-buffered footprint <= ~32 MiB of its 64 MiB per-TC VMEM).
    """
    assert dist.ndim == 1
    assert cutoff_upper > cutoff_lower, "alpha would divide by zero"
    assert tile_n >= _SUBLANE

    n = dist.shape[0]
    num_rbf = means.shape[0]
    alpha = cutoff_upper / (cutoff_upper - cutoff_lower)

    # --- Grid / tile sizing -------------------------------------------------
    # (a) bound padding waste: tile_eff = round_up(cdiv(n, num_tiles), 8)
    # (b) guarantee >= 2 (even) grid steps when n >= 16 so the "parallel"
    #     row axis shards across both v7x TensorCores.
    if n >= 2 * _SUBLANE:
        num_tiles = max(_cdiv(n, tile_n), 2)
        if num_tiles % 2:
            num_tiles += 1
    else:
        num_tiles = 1
    tile_eff = _round_up(_cdiv(n, num_tiles), _SUBLANE)
    n_pad = num_tiles * tile_eff

    # --- Wrapper-side prep ---------------------------------------------------
    if fuse_inner_exp:
        x = dist.astype(jnp.float32)
    else:
        # Per-edge inner exponential, lane-dense N-element XLA op (4N bytes of
        # extra traffic vs. the 200N-byte output) -> halves in-kernel EUP work.
        x = jnp.exp(alpha * (cutoff_lower - dist.astype(jnp.float32)))
    if n_pad != n:
        x = jnp.pad(x, (0, n_pad - n))

    x_2d = x.reshape(n_pad, 1)
    means_2d = means.reshape(1, num_rbf).astype(jnp.float32)
    nbetas_2d = (-betas).reshape(1, num_rbf).astype(jnp.float32)

    # --- Explicit VMEM budget (the (tile,1) input lane-pads to (tile,128)) ---
    rbf_pad = _round_up(num_rbf, _LANE)
    out_itemsize = jnp.dtype(out_dtype).itemsize
    per_buf = tile_eff * _LANE * 4 + tile_eff * rbf_pad * out_itemsize
    params_bytes = 2 * _SUBLANE * rbf_pad * 4
    vmem_limit = 2 * (per_buf + params_bytes) + (4 << 20)   # double-buffered + headroom
    vmem_limit = max(int(vmem_limit), 16 << 20)

    kernel = _make_kernel(fuse_inner_exp, alpha, cutoff_lower, exp_in_bf16)

    out = pl.pallas_call(
        kernel,
        out_shape=jax.ShapeDtypeStruct((n_pad, num_rbf), out_dtype),
        grid_spec=pltpu.PrefetchScalarGridSpec(
            num_scalar_prefetch=0,
            grid=(num_tiles,),
            in_specs=[
                pl.BlockSpec((tile_eff, 1), lambda i: (i, 0)),
                pl.BlockSpec((1, num_rbf), lambda i: (0, 0)),
                pl.BlockSpec((1, num_rbf), lambda i: (0, 0)),
            ],
            out_specs=pl.BlockSpec((tile_eff, num_rbf), lambda i: (i, 0)),
        ),
        compiler_params=pltpu.CompilerParams(
            # Independent row tiles: shard across the 2 TensorCores on v7x.
            dimension_semantics=("parallel",),
            vmem_limit_bytes=vmem_limit,
        ),
    )(x_2d, means_2d, nbetas_2d)

    if n_pad != n:
        out = out[:n]
    return out


def exp_normal_smearing_ref(dist, means, betas, cutoff_lower=0.0, cutoff_upper=10.0):
    """Pure-JAX reference mirroring the PyTorch forward."""
    alpha = cutoff_upper / (cutoff_upper - cutoff_lower)
    d = dist[..., None]
    return jnp.exp(-betas * (jnp.exp(alpha * (-d + cutoff_lower)) - means) ** 2)


if __name__ == "__main__":
    cutoff_lower = 0.0
    cutoff_upper = 10.0
    num_rbf = 50
    n_edges = 1000  # small synthetic edge count (not a multiple of the tile)

    means, betas = _initial_params(cutoff_lower, cutoff_upper, num_rbf)

    key = jax.random.PRNGKey(0)
    dist = jax.random.uniform(
        key, (n_edges,), dtype=jnp.float32, minval=0.0, maxval=cutoff_upper
    )
    ref = exp_normal_smearing_ref(dist, means, betas, cutoff_lower, cutoff_upper)

    # 1) Default path: hoisted inner exp, f32 output (exact parity, 1e-5).
    fn = jax.jit(
        lambda d, m, b: exp_normal_smearing(
            d, m, b, cutoff_lower=cutoff_lower, cutoff_upper=cutoff_upper
        )
    )
    out = jax.block_until_ready(fn(dist, means, betas))
    assert out.shape == (n_edges, num_rbf)
    assert jnp.allclose(out, ref, atol=1e-5, rtol=1e-5), "f32 path mismatch"

    # 2) Fused inner exp (recommended on v5e / small N), f32 output.
    fn_fused = jax.jit(
        lambda d, m, b: exp_normal_smearing(
            d, m, b, cutoff_lower=cutoff_lower, cutoff_upper=cutoff_upper,
            fuse_inner_exp=True,
        )
    )
    out_fused = jax.block_until_ready(fn_fused(dist, means, betas))
    assert jnp.allclose(out_fused, ref, atol=1e-5, rtol=1e-5), "fused path mismatch"

    # 3) bf16 output (halves write traffic on the write-bound v5e/v6e);
    #    arithmetic stays f32, so only the final store cast differs.
    fn_bf16 = jax.jit(
        lambda d, m, b: exp_normal_smearing(
            d, m, b, cutoff_lower=cutoff_lower, cutoff_upper=cutoff_upper,
            out_dtype=jnp.bfloat16,
        )
    )
    out_bf16 = jax.block_until_ready(fn_bf16(dist, means, betas))
    assert out_bf16.dtype == jnp.bfloat16
    assert jnp.allclose(out_bf16.astype(jnp.float32), ref, atol=1e-2, rtol=1e-2), \
        "bf16 path mismatch"

    # 4) Tiny N exercises the single-step / minimal-padding branch.
    dist_small = dist[:37]
    out_small = jax.block_until_ready(
        jax.jit(
            lambda d, m, b: exp_normal_smearing(
                d, m, b, cutoff_lower=cutoff_lower, cutoff_upper=cutoff_upper
            )
        )(dist_small, means, betas)
    )
    assert jnp.allclose(out_small, ref[:37], atol=1e-5, rtol=1e-5), "small-N mismatch"

    print("KERNEL_OK")
</pallas_src>

<mosaic_0001>
module attributes {stable_mosaic.version = 11 : i64} {
  func.func @kernel(%arg0: i32, %arg1: memref<504x1xf32, #tpu.memory_space<vmem>>, %arg2: memref<1x50xf32, #tpu.memory_space<vmem>>, %arg3: memref<1x50xf32, #tpu.memory_space<vmem>>, %arg4: memref<504x50xf32, #tpu.memory_space<vmem>>) attributes {dimension_semantics = [#tpu.dimension_semantics<parallel>], iteration_bounds = array<i64: 2>, scalar_prefetch = 0 : i64, scratch_operands = 0 : i64, tpu.core_type = #tpu.core_type<tc>, window_params = [{transform_indices = @transform_0, window_bounds = array<i64: 504, 1>}, {pipeline_mode = #tpu.pipeline_mode<synchronous>, transform_indices = @transform_1, window_bounds = array<i64: 1, 50>}, {pipeline_mode = #tpu.pipeline_mode<synchronous>, transform_indices = @transform_2, window_bounds = array<i64: 1, 50>}, {transform_indices = @transform_3, window_bounds = array<i64: 504, 50>}]} {
    %c0 = arith.constant 0 : index
    %c0_0 = arith.constant 0 : index
    %0 = vector.load %arg1[%c0, %c0_0] : memref<504x1xf32, #tpu.memory_space<vmem>>, vector<504x1xf32>
    %c0_1 = arith.constant 0 : index
    %c0_2 = arith.constant 0 : index
    %1 = vector.load %arg2[%c0_1, %c0_2] : memref<1x50xf32, #tpu.memory_space<vmem>>, vector<1x50xf32>
    %2 = vector.broadcast %0 : vector<504x1xf32> to vector<504x50xf32>
    %3 = vector.broadcast %1 : vector<1x50xf32> to vector<504x50xf32>
    %4 = arith.subf %2, %3 : vector<504x50xf32>
    %c0_3 = arith.constant 0 : index
    %c0_4 = arith.constant 0 : index
    %5 = vector.load %arg3[%c0_3, %c0_4] : memref<1x50xf32, #tpu.memory_space<vmem>>, vector<1x50xf32>
    %6 = vector.broadcast %5 : vector<1x50xf32> to vector<504x50xf32>
    %7 = arith.mulf %6, %4 : vector<504x50xf32>
    %8 = arith.mulf %7, %4 : vector<504x50xf32>
    %9 = math.exp %8 : vector<504x50xf32>
    %c0_5 = arith.constant 0 : index
    %c0_6 = arith.constant 0 : index
    %10 = vector.load %arg4[%c0_5, %c0_6] : memref<504x50xf32, #tpu.memory_space<vmem>>, vector<504x50xf32>
    tpu.vector_store %arg4[%c0_5, %c0_6], %9 {strides = array<i32>} : memref<504x50xf32, #tpu.memory_space<vmem>>, vector<504x50xf32>,
    return
  }
  func.func @transform_0(%arg0: i32) -> (i32, i32) {
    %c0_i32 = arith.constant 0 : i32
    %c0_i32_0 = arith.constant 0 : i32
    return %arg0, %c0_i32 : i32, i32
  }
  func.func @transform_1(%arg0: i32) -> (i32, i32) {
    %c0_i32 = arith.constant 0 : i32
    %c0_i32_0 = arith.constant 0 : i32
    %c0_i32_1 = arith.constant 0 : i32
    return %c0_i32, %c0_i32_0 : i32, i32
  }
  func.func @transform_2(%arg0: i32) -> (i32, i32) {
    %c0_i32 = arith.constant 0 : i32
    %c0_i32_0 = arith.constant 0 : i32
    %c0_i32_1 = arith.constant 0 : i32
    return %c0_i32, %c0_i32_0 : i32, i32
  }
  func.func @transform_3(%arg0: i32) -> (i32, i32) {
    %c0_i32 = arith.constant 0 : i32
    %c0_i32_0 = arith.constant 0 : i32
    return %arg0, %c0_i32 : i32, i32
  }
}

</mosaic_0001>

<bundles_post_ra>
// kernel: _lambda_.1
= control target key start
LH: loop header
LB: loop body
LE: loop exit
PB: predicated region body
PF: predicated region fallthrough
CT: control target
= control target key end

     0   :  { %s1178_s12 = smov 0   ;;  %s1531_s0 = inlined_call_operand.vmem [shape: f32[1008,1], index: 0, kind: input, shape index: {}]   ;;  %s1532_s1 = inlined_call_operand.vmem [shape: f32[1,50], index: 1, kind: input, shape index: {}]   ;;  %s1533_s2 = inlined_call_operand.vmem [shape: f32[1,50], index: 2, kind: input, shape index: {}]   ;;  %s1534_s3 = inlined_call_operand.vmem [shape: f32[1008,50], index: 3, kind: output, shape index: {}]  }
   0x1 LB: > { %s1001_s13 = sadd.s32 4294967295, %s1155_s12   ;;  %p1005_p0 = scmp.ge.s32.totalorder %s1155_s12, 1  ;;  %s1155_s12 = sphi %s1178_s12, %s13_s12  }
   0x2   : > { %p138_p1 = scmp.lt.s32.totalorder %s1155_s12, 3 }
   0x4   : > { %p139_p2 = pnand %p1005_p0, %p138_p1 }
   0x5   : > { %s162_s14 = smul.u32 (!%p139_p2), 63, %s1001_s13  ;;  %v1157_v0 = vmov (!%p139_p2), 0   ;;  %vm881_vm0 = vcmask (!%p139_p2), 408576  }
   0x6   : > { %142 = sbr.rel (%p139_p2) target bundleno = 290 (0x122), region = 32  ;;  %1022 = vset.pattern.permute.xlu1 (!%p139_p2), %v1157_v0  ;;  %1021 = vset.pattern.permute.xlu0 (!%p139_p2), %v1157_v0  ;;  %v1262_v0 = vld [vmem:[%s1532_s1] ss:$0 sm:$0xff] (!%p139_p2) }
   0x7   : > { %p163_p3 = scmp.lt.s32.totalorder (!%p139_p2), %s162_s14, 125 }
   0xd   : > { %s1536_s14 = smov (!%p163_p3, %s162_s14), 125 }
   0xe   : > { %s1006_s15 = sshll.u32 %s1536_s14, 3 }
   0xf   : > { %s1194_s18 = scalar_lea.vmem %s1531_s0, %s1006_s15  ;;  %s1291_s25 = scalar_lea.vmem %s1534_s3, %s1006_s15 }
  0x10   : > { %v176_v1 = vld [vmem:[%s1194_s18 + $0x10] sm:$0xff]  ;;  %v174_v2 = vld [vmem:[%s1194_s18] sm:$0xff]  ;;  %v177_v3 = vld [vmem:[%s1194_s18 + $0x18] sm:$0xff] }
  0x11   : > { %250 = vperm.xlu1 %1022, %v176_v1   ;;  %240 = vperm.xlu0 %1021, %v174_v2   ;;  %v175_v4 = vld [vmem:[%s1194_s18 + $0x8] sm:$0xff]  ;;  %v178_v6 = vld [vmem:[%s1194_s18 + $0x20] sm:$0xff]  ;;  %v181_v7 = vld [vmem:[%s1194_s18 + $0x38] sm:$0xff] }
  0x12   : > { %v179_v5 = vld [vmem:[%s1194_s18 + $0x28] sm:$0xff]  ;;  %v180_v8 = vld [vmem:[%s1194_s18 + $0x30] sm:$0xff]  ;;  %v182_v10 = vld [vmem:[%s1194_s18 + $0x40] sm:$0xff] }
  0x13   : > { %v183_v9 = vld [vmem:[%s1194_s18 + $0x48] sm:$0xff]  ;;  %v185_v11 = vld [vmem:[%s1194_s18 + $0x58] sm:$0xff]  ;;  %v184_v12 = vld [vmem:[%s1194_s18 + $0x50] sm:$0xff] }
  0x14   : > { %v187_v13 = vld [vmem:[%s1194_s18 + $0x68] sm:$0xff]  ;;  %v186_v14 = vld [vmem:[%s1194_s18 + $0x60] sm:$0xff]  ;;  %v189_v15 = vld [vmem:[%s1194_s18 + $0x78] sm:$0xff] }
  0x15   : > { %255 = vperm.xlu1 %1022, %v177_v3   ;;  %245 = vperm.xlu0 %1021, %v175_v4   ;;  %v188_v16 = vld [vmem:[%s1194_s18 + $0x70] sm:$0xff]  ;;  %v191_v17 = vld [vmem:[%s1194_s18 + $0x88] sm:$0xff]  ;;  %v190_v18 = vld [vmem:[%s1194_s18 + $0x80] sm:$0xff] }
  0x16   : > { %v193_v19 = vld [vmem:[%s1194_s18 + $0x98] sm:$0xff]  ;;  %v192_v20 = vld [vmem:[%s1194_s18 + $0x90] sm:$0xff]  ;;  %v195_v21 = vld [vmem:[%s1194_s18 + $0xa8] sm:$0xff] }
  0x17   : > { %v194_v22 = vld [vmem:[%s1194_s18 + $0xa0] sm:$0xff]  ;;  %v197_v23 = vld [vmem:[%s1194_s18 + $0xb8] sm:$0xff]  ;;  %v196_v24 = vld [vmem:[%s1194_s18 + $0xb0] sm:$0xff] }
  0x18   : > { %v199_v25 = vld [vmem:[%s1194_s18 + $0xc8] sm:$0xff]  ;;  %v198_v26 = vld [vmem:[%s1194_s18 + $0xc0] sm:$0xff]  ;;  %v201_v27 = vld [vmem:[%s1194_s18 + $0xd8] sm:$0xff] }
  0x19   : > { %265 = vperm.xlu1 %1022, %v179_v5   ;;  %260 = vperm.xlu0 %1021, %v178_v6   ;;  %v200_v28 = vld [vmem:[%s1194_s18 + $0xd0] sm:$0xff]  ;;  %v203_v29 = vld [vmem:[%s1194_s18 + $0xe8] sm:$0xff]  ;;  %v202_v30 = vld [vmem:[%s1194_s18 + $0xe0] sm:$0xff] }
  0x1a   : > { %v205_v31 = vld [vmem:[%s1194_s18 + $0xf8] sm:$0xff]  ;;  %v204_v32 = vld [vmem:[%s1194_s18 + $0xf0] sm:$0xff]  ;;  %v207_v33 = vld [vmem:[%s1194_s18 + $0x108] sm:$0xff] }
  0x1b   : > { %v206_v34 = vld [vmem:[%s1194_s18 + $0x100] sm:$0xff]  ;;  %v209_v35 = vld [vmem:[%s1194_s18 + $0x118] sm:$0xff]  ;;  %v208_v36 = vld [vmem:[%s1194_s18 + $0x110] sm:$0xff] }
  0x1c   : > { %v211_v37 = vld [vmem:[%s1194_s18 + $0x128] sm:$0xff]  ;;  %v210_v38 = vld [vmem:[%s1194_s18 + $0x120] sm:$0xff]  ;;  %v213_v39 = vld [vmem:[%s1194_s18 + $0x138] sm:$0xff] }
  0x1d   : > { %275 = vperm.xlu1 %1022, %v181_v7   ;;  %270 = vperm.xlu0 %1021, %v180_v8   ;;  %v212_v40 = vld [vmem:[%s1194_s18 + $0x130] sm:$0xff]  ;;  %v215_v41 = vld [vmem:[%s1194_s18 + $0x148] sm:$0xff]  ;;  %v214_v42 = vld [vmem:[%s1194_s18 + $0x140] sm:$0xff] }
  0x1e   : > { %v217_v43 = vld [vmem:[%s1194_s18 + $0x158] sm:$0xff]  ;;  %v216_v44 = vld [vmem:[%s1194_s18 + $0x150] sm:$0xff]  ;;  %v219_v45 = vld [vmem:[%s1194_s18 + $0x168] sm:$0xff] }
  0x1f   : > { %v218_v46 = vld [vmem:[%s1194_s18 + $0x160] sm:$0xff]  ;;  %v221_v47 = vld [vmem:[%s1194_s18 + $0x178] sm:$0xff]  ;;  %v220_v48 = vld [vmem:[%s1194_s18 + $0x170] sm:$0xff] }
  0x20   : > { %v223_v49 = vld [vmem:[%s1194_s18 + $0x188] sm:$0xff]  ;;  %v222_v50 = vld [vmem:[%s1194_s18 + $0x180] sm:$0xff]  ;;  %v225_v51 = vld [vmem:[%s1194_s18 + $0x198] sm:$0xff] }
  0x21   : > { %285 = vperm.xlu1 %1022, %v183_v9   ;;  %280 = vperm.xlu0 %1021, %v182_v10   ;;  %v224_v52 = vld [vmem:[%s1194_s18 + $0x190] sm:$0xff]  ;;  %v227_v53 = vld [vmem:[%s1194_s18 + $0x1a8] sm:$0xff]  ;;  %v226_v54 = vld [vmem:[%s1194_s18 + $0x1a0] sm:$0xff] }
  0x22   : > { %v229_v55 = vld [vmem:[%s1194_s18 + $0x1b8] sm:$0xff]  ;;  %v228_v56 = vld [vmem:[%s1194_s18 + $0x1b0] sm:$0xff]  ;;  %v231_v57 = vld [vmem:[%s1194_s18 + $0x1c8] sm:$0xff] }
  0x23   : > { %v230_v58 = vld [vmem:[%s1194_s18 + $0x1c0] sm:$0xff]  ;;  %v233_v59 = vld [vmem:[%s1194_s18 + $0x1d8] sm:$0xff]  ;;  %v232_v60 = vld [vmem:[%s1194_s18 + $0x1d0] sm:$0xff] }
  0x24   : > { %v235_v61 = vld [vmem:[%s1194_s18 + $0x1e8] sm:$0xff]  ;;  %v234_v62 = vld [vmem:[%s1194_s18 + $0x1e0] sm:$0xff]  ;;  %v236_v63 = vld [vmem:[%s1194_s18 + $0x1f0] sm:$0xff] }
  0x25   : > { %295 = vperm.xlu1 %1022, %v185_v11   ;;  %290 = vperm.xlu0 %1021, %v184_v12   ;;  %v1267_v1 = vld [vmem:[%s1533_s2] ss:$0 sm:$0xff] }
  0x29   : > { %305 = vperm.xlu1 %1022, %v187_v13   ;;  %300 = vperm.xlu0 %1021, %v186_v14  }
  0x2d   : > { %315 = vperm.xlu1 %1022, %v189_v15   ;;  %310 = vperm.xlu0 %1021, %v188_v16  }
  0x31   : > { %325 = vperm.xlu1 %1022, %v191_v17   ;;  %320 = vperm.xlu0 %1021, %v190_v18  }
  0x35   : > { %335 = vperm.xlu1 %1022, %v193_v19   ;;  %330 = vperm.xlu0 %1021, %v192_v20  }
  0x39   : > { %345 = vperm.xlu1 %1022, %v195_v21   ;;  %340 = vperm.xlu0 %1021, %v194_v22  }
  0x3d   : > { %355 = vperm.xlu1 %1022, %v197_v23   ;;  %350 = vperm.xlu0 %1021, %v196_v24  }
  0x41   : > { %365 = vperm.xlu1 %1022, %v199_v25   ;;  %360 = vperm.xlu0 %1021, %v198_v26  }
  0x45   : > { %375 = vperm.xlu1 %1022, %v201_v27   ;;  %370 = vperm.xlu0 %1021, %v200_v28  }
  0x49   : > { %385 = vperm.xlu1 %1022, %v203_v29   ;;  %380 = vperm.xlu0 %1021, %v202_v30  }
  0x4d   : > { %395 = vperm.xlu1 %1022, %v205_v31   ;;  %390 = vperm.xlu0 %1021, %v204_v32  }
  0x51   : > { %405 = vperm.xlu1 %1022, %v207_v33   ;;  %400 = vperm.xlu0 %1021, %v206_v34  }
  0x55   : > { %415 = vperm.xlu1 %1022, %v209_v35   ;;  %410 = vperm.xlu0 %1021, %v208_v36  }
  0x59   : > { %425 = vperm.xlu1 %1022, %v211_v37   ;;  %420 = vperm.xlu0 %1021, %v210_v38  }
  0x5d   : > { %435 = vperm.xlu1 %1022, %v213_v39   ;;  %430 = vperm.xlu0 %1021, %v212_v40  }
  0x61   : > { %445 = vperm.xlu1 %1022, %v215_v41   ;;  %440 = vperm.xlu0 %1021, %v214_v42  }
  0x65   : > { %455 = vperm.xlu1 %1022, %v217_v43   ;;  %450 = vperm.xlu0 %1021, %v216_v44  }
  0x69   : > { %465 = vperm.xlu1 %1022, %v219_v45   ;;  %460 = vperm.xlu0 %1021, %v218_v46  }
  0x6d   : > { %475 = vperm.xlu1 %1022, %v221_v47   ;;  %470 = vperm.xlu0 %1021, %v220_v48  }
  0x71   : > { %485 = vperm.xlu1 %1022, %v223_v49   ;;  %480 = vperm.xlu0 %1021, %v222_v50  }
  0x75   : > { %495 = vperm.xlu1 %1022, %v225_v51   ;;  %490 = vperm.xlu0 %1021, %v224_v52  }
  0x79   : > { %505 = vperm.xlu1 %1022, %v227_v53   ;;  %500 = vperm.xlu0 %1021, %v226_v54  }
  0x7d   : > { %515 = vperm.xlu1 %1022, %v229_v55   ;;  %510 = vperm.xlu0 %1021, %v228_v56  }
  0x81   : > { %525 = vperm.xlu1 %1022, %v231_v57   ;;  %520 = vperm.xlu0 %1021, %v230_v58  }
  0x85   : > { %535 = vperm.xlu1 %1022, %v233_v59   ;;  %530 = vperm.xlu0 %1021, %v232_v60  }
  0x89   : > { %545 = vperm.xlu1 %1022, %v235_v61   ;;  %540 = vperm.xlu0 %1021, %v234_v62  }
  0x8d   : > { %550 = vperm.xlu0 %1021, %v236_v63  }
  0x90   : > { %v251_v2 = vpop.permute.xlu1 %250  ;;  %v241_v3 = vpop.permute.xlu0 %240 }
  0x91   : > { %v561_v4 = vsub.f32 %v251_v2, %v1262_v0  ;;  %v559_v5 = vsub.f32 %v241_v3, %v1262_v0 }
  0x93   : > { %v631_v6 = vmul.f32 %v1267_v1, %v561_v4  ;;  %v629_v7 = vmul.f32 %v1267_v1, %v559_v5 }
  0x94   : > { %v256_v8 = vpop.permute.xlu1 %255  ;;  %v246_v9 = vpop.permute.xlu0 %245 }
  0x95   : > { %v694_v10 = vmul.f32 %v631_v6, %v561_v4  ;;  %v692_v11 = vmul.f32 %v629_v7, %v559_v5  ;;  %v562_v12 = vsub.f32 %v256_v8, %v1262_v0  ;;  %v560_v13 = vsub.f32 %v246_v9, %v1262_v0 }
  0x97   : > { %v759_v14 = vmul.f32 1.442695, %v694_v10  ;;  %v755_v15 = vmul.f32 1.442695, %v692_v11  ;;  %v632_v16 = vmul.f32 %v1267_v1, %v562_v12  ;;  %v630_v17 = vmul.f32 %v1267_v1, %v560_v13 }
  0x98   : > { %v266_v18 = vpop.permute.xlu1 %265  ;;  %v261_v19 = vpop.permute.xlu0 %260 }
  0x99   : > { %1023 = vpow2.f32 %v759_v14  ;;  %v695_v20 = vmul.f32 %v632_v16, %v562_v12  ;;  %v693_v21 = vmul.f32 %v630_v17, %v560_v13  ;;  %v564_v22 = vsub.f32 %v266_v18, %v1262_v0 }
  0x9a   : > { %1025 = vpow2.f32 %v755_v15  ;;  %v563_v23 = vsub.f32 %v261_v19, %v1262_v0 }
  0x9b   : > { %v761_v24 = vmul.f32 1.442695, %v695_v20  ;;  %v757_v25 = vmul.f32 1.442695, %v693_v21  ;;  %v634_v26 = vmul.f32 %v1267_v1, %v564_v22 }
  0x9c   : > { %v633_v27 = vmul.f32 %v1267_v1, %v563_v23  ;;  %v276_v28 = vpop.permute.xlu1 %275  ;;  %v271_v29 = vpop.permute.xlu0 %270 }
  0x9d   : > { %1027 = vpow2.f32 %v761_v24  ;;  %v697_v30 = vmul.f32 %v634_v26, %v564_v22  ;;  %v566_v31 = vsub.f32 %v276_v28, %v1262_v0  ;;  %v565_v32 = vsub.f32 %v271_v29, %v1262_v0 }
  0x9e   : > { %1029 = vpow2.f32 %v757_v25  ;;  %v696_v33 = vmul.f32 %v633_v27, %v563_v23 }
  0x9f   : > { %v765_v34 = vmul.f32 1.442695, %v697_v30  ;;  %v636_v35 = vmul.f32 %v1267_v1, %v566_v31  ;;  %v635_v36 = vmul.f32 %v1267_v1, %v565_v32 }
  0xa0   : > { %v763_v37 = vmul.f32 1.442695, %v696_v33  ;;  %v286_v38 = vpop.permute.xlu1 %285  ;;  %v281_v39 = vpop.permute.xlu0 %280 }
  0xa1   : > { %1031 = vpow2.f32 %v765_v34  ;;  %v699_v40 = vmul.f32 %v636_v35, %v566_v31  ;;  %v698_v41 = vmul.f32 %v635_v36, %v565_v32  ;;  %v568_v42 = vsub.f32 %v286_v38, %v1262_v0 }
  0xa2   : > { %1033 = vpow2.f32 %v763_v37  ;;  %v567_v43 = vsub.f32 %v281_v39, %v1262_v0 }
  0xa3   : > { %v1024_v44 = vpop.eup %1023  ;;  %v769_v45 = vmul.f32 1.442695, %v699_v40  ;;  %v767_v46 = vmul.f32 1.442695, %v698_v41  ;;  %v638_v47 = vmul.f32 %v1267_v1, %v568_v42 }
  0xa4   : > { %v1026_v48 = vpop.eup %1025  ;;  %884 = vst.msk [vmem:[%s1291_s25 + $0x10] sm:$0xff] %vm881_vm0, %v1024_v44  ;;  %v637_v49 = vmul.f32 %v1267_v1, %v567_v43  ;;  %v296_v50 = vpop.permute.xlu1 %295 }
  0xa5   : > { %v291_v51 = vpop.permute.xlu0 %290  ;;  %882 = vst.msk [vmem:[%s1291_s25] sm:$0xff] %vm881_vm0, %v1026_v48  ;;  %1035 = vpow2.f32 %v769_v45  ;;  %v701_v52 = vmul.f32 %v638_v47, %v568_v42  ;;  %v570_v53 = vsub.f32 %v296_v50, %v1262_v0 }
  0xa6   : > { %v569_v54 = vsub.f32 %v291_v51, %v1262_v0  ;;  %1037 = vpow2.f32 %v767_v46  ;;  %v700_v55 = vmul.f32 %v637_v49, %v567_v43 }
  0xa7   : > { %v1028_v56 = vpop.eup %1027  ;;  %v773_v57 = vmul.f32 1.442695, %v701_v52  ;;  %v640_v58 = vmul.f32 %v1267_v1, %v570_v53 }
  0xa8   : > { %v639_v59 = vmul.f32 %v1267_v1, %v569_v54  ;;  %v1030_v60 = vpop.eup %1029  ;;  %885 = vst.msk [vmem:[%s1291_s25 + $0x18] sm:$0xff] %vm881_vm0, %v1028_v56  ;;  %v771_v61 = vmul.f32 1.442695, %v700_v55  ;;  %v306_v62 = vpop.permute.xlu1 %305 }
  0xa9   : > { %v301_v63 = vpop.permute.xlu0 %300  ;;  %883 = vst.msk [vmem:[%s1291_s25 + $0x8] sm:$0xff] %vm881_vm0, %v1030_v60  ;;  %1039 = vpow2.f32 %v773_v57  ;;  %v703_v2 = vmul.f32 %v640_v58, %v570_v53  ;;  %v572_v4 = vsub.f32 %v306_v62, %v1262_v0 }
  0xaa   : > { %v702_v3 = vmul.f32 %v639_v59, %v569_v54  ;;  %1041 = vpow2.f32 %v771_v61  ;;  %v571_v5 = vsub.f32 %v301_v63, %v1262_v0 }
  0xab   : > { %v1032_v6 = vpop.eup %1031  ;;  %v777_v7 = vmul.f32 1.442695, %v703_v2  ;;  %v642_v9 = vmul.f32 %v1267_v1, %v572_v4 }
  0xac   : > { %v775_v8 = vmul.f32 1.442695, %v702_v3  ;;  %v1034_v10 = vpop.eup %1033  ;;  %887 = vst.msk [vmem:[%s1291_s25 + $0x28] sm:$0xff] %vm881_vm0, %v1032_v6  ;;  %v641_v11 = vmul.f32 %v1267_v1, %v571_v5  ;;  %v316_v12 = vpop.permute.xlu1 %315 }
  0xad   : > { %v311_v13 = vpop.permute.xlu0 %310  ;;  %886 = vst.msk [vmem:[%s1291_s25 + $0x20] sm:$0xff] %vm881_vm0, %v1034_v10  ;;  %1043 = vpow2.f32 %v777_v7  ;;  %v705_v14 = vmul.f32 %v642_v9, %v572_v4  ;;  %v574_v15 = vsub.f32 %v316_v12, %v1262_v0 }
  0xae   : > { %v573_v16 = vsub.f32 %v311_v13, %v1262_v0  ;;  %1045 = vpow2.f32 %v775_v8  ;;  %v704_v17 = vmul.f32 %v641_v11, %v571_v5 }
  0xaf   : > { %v1036_v18 = vpop.eup %1035  ;;  %v781_v19 = vmul.f32 1.442695, %v705_v14  ;;  %v644_v20 = vmul.f32 %v1267_v1, %v574_v15 }
  0xb0   : > { %v643_v21 = vmul.f32 %v1267_v1, %v573_v16  ;;  %v1038_v22 = vpop.eup %1037  ;;  %889 = vst.msk [vmem:[%s1291_s25 + $0x38] sm:$0xff] %vm881_vm0, %v1036_v18  ;;  %v779_v23 = vmul.f32 1.442695, %v704_v17  ;;  %v326_v24 = vpop.permute.xlu1 %325 }
  0xb1   : > { %v321_v25 = vpop.permute.xlu0 %320  ;;  %888 = vst.msk [vmem:[%s1291_s25 + $0x30] sm:$0xff] %vm881_vm0, %v1038_v22  ;;  %1047 = vpow2.f32 %v781_v19  ;;  %v707_v26 = vmul.f32 %v644_v20, %v574_v15  ;;  %v576_v28 = vsub.f32 %v326_v24, %v1262_v0 }
  0xb2   : > { %v706_v27 = vmul.f32 %v643_v21, %v573_v16  ;;  %1049 = vpow2.f32 %v779_v23  ;;  %v575_v29 = vsub.f32 %v321_v25, %v1262_v0 }
  0xb3   : > { %v1040_v30 = vpop.eup %1039  ;;  %v785_v31 = vmul.f32 1.442695, %v707_v26  ;;  %v646_v33 = vmul.f32 %v1267_v1, %v576_v28 }
  0xb4   : > { %v783_v32 = vmul.f32 1.442695, %v706_v27  ;;  %v1042_v34 = vpop.eup %1041  ;;  %891 = vst.msk [vmem:[%s1291_s25 + $0x48] sm:$0xff] %vm881_vm0, %v1040_v30  ;;  %v645_v35 = vmul.f32 %v1267_v1, %v575_v29  ;;  %v336_v36 = vpop.permute.xlu1 %335 }
  0xb5   : > { %v331_v37 = vpop.permute.xlu0 %330  ;;  %890 = vst.msk [vmem:[%s1291_s25 + $0x40] sm:$0xff] %vm881_vm0, %v1042_v34  ;;  %1051 = vpow2.f32 %v785_v31  ;;  %v709_v38 = vmul.f32 %v646_v33, %v576_v28  ;;  %v578_v39 = vsub.f32 %v336_v36, %v1262_v0 }
  0xb6   : > { %v577_v40 = vsub.f32 %v331_v37, %v1262_v0  ;;  %1053 = vpow2.f32 %v783_v32  ;;  %v708_v41 = vmul.f32 %v645_v35, %v575_v29 }
  0xb7   : > { %v1044_v42 = vpop.eup %1043  ;;  %v789_v43 = vmul.f32 1.442695, %v709_v38  ;;  %v648_v44 = vmul.f32 %v1267_v1, %v578_v39 }
  0xb8   : > { %v647_v45 = vmul.f32 %v1267_v1, %v577_v40  ;;  %v1046_v46 = vpop.eup %1045  ;;  %893 = vst.msk [vmem:[%s1291_s25 + $0x58] sm:$0xff] %vm881_vm0, %v1044_v42  ;;  %v787_v47 = vmul.f32 1.442695, %v708_v41  ;;  %v346_v48 = vpop.permute.xlu1 %345 }
  0xb9   : > { %v341_v49 = vpop.permute.xlu0 %340  ;;  %892 = vst.msk [vmem:[%s1291_s25 + $0x50] sm:$0xff] %vm881_vm0, %v1046_v46  ;;  %1055 = vpow2.f32 %v789_v43  ;;  %v711_v50 = vmul.f32 %v648_v44, %v578_v39  ;;  %v580_v52 = vsub.f32 %v346_v48, %v1262_v0 }
  0xba   : > { %v710_v51 = vmul.f32 %v647_v45, %v577_v40  ;;  %1057 = vpow2.f32 %v787_v47  ;;  %v579_v53 = vsub.f32 %v341_v49, %v1262_v0 }
  0xbb   : > { %v1048_v54 = vpop.eup %1047  ;;  %v793_v55 = vmul.f32 1.442695, %v711_v50  ;;  %v650_v57 = vmul.f32 %v1267_v1, %v580_v52 }
  0xbc   : > { %v791_v56 = vmul.f32 1.442695, %v710_v51  ;;  %v1050_v58 = vpop.eup %1049  ;;  %895 = vst.msk [vmem:[%s1291_s25 + $0x68] sm:$0xff] %vm881_vm0, %v1048_v54  ;;  %v649_v59 = vmul.f32 %v1267_v1, %v579_v53  ;;  %v356_v60 = vpop.permute.xlu1 %355 }
  0xbd   : > { %v351_v61 = vpop.permute.xlu0 %350  ;;  %894 = vst.msk [vmem:[%s1291_s25 + $0x60] sm:$0xff] %vm881_vm0, %v1050_v58  ;;  %1059 = vpow2.f32 %v793_v55  ;;  %v713_v62 = vmul.f32 %v650_v57, %v580_v52  ;;  %v582_v63 = vsub.f32 %v356_v60, %v1262_v0 }
  0xbe   : > { %v581_v2 = vsub.f32 %v351_v61, %v1262_v0  ;;  %1061 = vpow2.f32 %v791_v56  ;;  %v712_v3 = vmul.f32 %v649_v59, %v579_v53 }
  0xbf   : > { %v1052_v4 = vpop.eup %1051  ;;  %v797_v5 = vmul.f32 1.442695, %v713_v62  ;;  %v652_v6 = vmul.f32 %v1267_v1, %v582_v63 }
  0xc0   : > { %v651_v7 = vmul.f32 %v1267_v1, %v581_v2  ;;  %v1054_v8 = vpop.eup %1053  ;;  %897 = vst.msk [vmem:[%s1291_s25 + $0x78] sm:$0xff] %vm881_vm0, %v1052_v4  ;;  %v795_v9 = vmul.f32 1.442695, %v712_v3  ;;  %v366_v10 = vpop.permute.xlu1 %365 }
  0xc1   : > { %v361_v11 = vpop.permute.xlu0 %360  ;;  %896 = vst.msk [vmem:[%s1291_s25 + $0x70] sm:$0xff] %vm881_vm0, %v1054_v8  ;;  %1063 = vpow2.f32 %v797_v5  ;;  %v715_v12 = vmul.f32 %v652_v6, %v582_v63  ;;  %v584_v14 = vsub.f32 %v366_v10, %v1262_v0 }
  0xc2   : > { %v714_v13 = vmul.f32 %v651_v7, %v581_v2  ;;  %1065 = vpow2.f32 %v795_v9  ;;  %v583_v15 = vsub.f32 %v361_v11, %v1262_v0 }
  0xc3   : > { %v1056_v16 = vpop.eup %1055  ;;  %v801_v17 = vmul.f32 1.442695, %v715_v12  ;;  %v654_v19 = vmul.f32 %v1267_v1, %v584_v14 }
  0xc4   : > { %v799_v18 = vmul.f32 1.442695, %v714_v13  ;;  %v1058_v20 = vpop.eup %1057  ;;  %899 = vst.msk [vmem:[%s1291_s25 + $0x88] sm:$0xff] %vm881_vm0, %v1056_v16  ;;  %v653_v21 = vmul.f32 %v1267_v1, %v583_v15  ;;  %v376_v22 = vpop.permute.xlu1 %375 }
  0xc5   : > { %v371_v23 = vpop.permute.xlu0 %370  ;;  %898 = vst.msk [vmem:[%s1291_s25 + $0x80] sm:$0xff] %vm881_vm0, %v1058_v20  ;;  %1067 = vpow2.f32 %v801_v17  ;;  %v717_v24 = vmul.f32 %v654_v19, %v584_v14  ;;  %v586_v25 = vsub.f32 %v376_v22, %v1262_v0 }
  0xc6   : > { %v585_v26 = vsub.f32 %v371_v23, %v1262_v0  ;;  %1069 = vpow2.f32 %v799_v18  ;;  %v716_v27 = vmul.f32 %v653_v21, %v583_v15 }
  0xc7   : > { %v1060_v28 = vpop.eup %1059  ;;  %v805_v29 = vmul.f32 1.442695, %v717_v24  ;;  %v656_v30 = vmul.f32 %v1267_v1, %v586_v25 }
  0xc8   : > { %v655_v31 = vmul.f32 %v1267_v1, %v585_v26  ;;  %v1062_v32 = vpop.eup %1061  ;;  %901 = vst.msk [vmem:[%s1291_s25 + $0x98] sm:$0xff] %vm881_vm0, %v1060_v28  ;;  %v803_v33 = vmul.f32 1.442695, %v716_v27  ;;  %v386_v34 = vpop.permute.xlu1 %385 }
  0xc9   : > { %v381_v35 = vpop.permute.xlu0 %380  ;;  %900 = vst.msk [vmem:[%s1291_s25 + $0x90] sm:$0xff] %vm881_vm0, %v1062_v32  ;;  %1071 = vpow2.f32 %v805_v29  ;;  %v719_v36 = vmul.f32 %v656_v30, %v586_v25  ;;  %v588_v38 = vsub.f32 %v386_v34, %v1262_v0 }
  0xca   : > { %v718_v37 = vmul.f32 %v655_v31, %v585_v26  ;;  %1073 = vpow2.f32 %v803_v33  ;;  %v587_v39 = vsub.f32 %v381_v35, %v1262_v0 }
  0xcb   : > { %v1064_v40 = vpop.eup %1063  ;;  %v809_v41 = vmul.f32 1.442695, %v719_v36  ;;  %v658_v43 = vmul.f32 %v1267_v1, %v588_v38 }
  0xcc   : > { %v807_v42 = vmul.f32 1.442695, %v718_v37  ;;  %v1066_v44 = vpop.eup %1065  ;;  %903 = vst.msk [vmem:[%s1291_s25 + $0xa8] sm:$0xff] %vm881_vm0, %v1064_v40  ;;  %v657_v45 = vmul.f32 %v1267_v1, %v587_v39  ;;  %v396_v46 = vpop.permute.xlu1 %395 }
  0xcd   : > { %v391_v47 = vpop.permute.xlu0 %390  ;;  %902 = vst.msk [vmem:[%s1291_s25 + $0xa0] sm:$0xff] %vm881_vm0, %v1066_v44  ;;  %1075 = vpow2.f32 %v809_v41  ;;  %v721_v48 = vmul.f32 %v658_v43, %v588_v38  ;;  %v590_v49 = vsub.f32 %v396_v46, %v1262_v0 }
  0xce   : > { %v589_v50 = vsub.f32 %v391_v47, %v1262_v0  ;;  %1077 = vpow2.f32 %v807_v42  ;;  %v720_v51 = vmul.f32 %v657_v45, %v587_v39 }
  0xcf   : > { %v1068_v52 = vpop.eup %1067  ;;  %v813_v53 = vmul.f32 1.442695, %v721_v48  ;;  %v660_v54 = vmul.f32 %v1267_v1, %v590_v49 }
  0xd0   : > { %v659_v55 = vmul.f32 %v1267_v1, %v589_v50  ;;  %v1070_v56 = vpop.eup %1069  ;;  %905 = vst.msk [vmem:[%s1291_s25 + $0xb8] sm:$0xff] %vm881_vm0, %v1068_v52  ;;  %v811_v57 = vmul.f32 1.442695, %v720_v51  ;;  %v406_v58 = vpop.permute.xlu1 %405 }
  0xd1   : > { %v401_v59 = vpop.permute.xlu0 %400  ;;  %904 = vst.msk [vmem:[%s1291_s25 + $0xb0] sm:$0xff] %vm881_vm0, %v1070_v56  ;;  %1079 = vpow2.f32 %v813_v53  ;;  %v723_v60 = vmul.f32 %v660_v54, %v590_v49  ;;  %v592_v62 = vsub.f32 %v406_v58, %v1262_v0 }
  0xd2   : > { %v722_v61 = vmul.f32 %v659_v55, %v589_v50  ;;  %1081 = vpow2.f32 %v811_v57  ;;  %v591_v63 = vsub.f32 %v401_v59, %v1262_v0 }
  0xd3   : > { %v1072_v2 = vpop.eup %1071  ;;  %v817_v3 = vmul.f32 1.442695, %v723_v60  ;;  %v662_v5 = vmul.f32 %v1267_v1, %v592_v62 }
  0xd4   : > { %v815_v4 = vmul.f32 1.442695, %v722_v61  ;;  %v1074_v6 = vpop.eup %1073  ;;  %907 = vst.msk [vmem:[%s1291_s25 + $0xc8] sm:$0xff] %vm881_vm0, %v1072_v2  ;;  %v661_v7 = vmul.f32 %v1267_v1, %v591_v63  ;;  %v416_v8 = vpop.permute.xlu1 %415 }
  0xd5   : > { %v411_v9 = vpop.permute.xlu0 %410  ;;  %906 = vst.msk [vmem:[%s1291_s25 + $0xc0] sm:$0xff] %vm881_vm0, %v1074_v6  ;;  %1083 = vpow2.f32 %v817_v3  ;;  %v725_v10 = vmul.f32 %v662_v5, %v592_v62  ;;  %v594_v11 = vsub.f32 %v416_v8, %v1262_v0 }
  0xd6   : > { %v593_v12 = vsub.f32 %v411_v9, %v1262_v0  ;;  %1085 = vpow2.f32 %v815_v4  ;;  %v724_v13 = vmul.f32 %v661_v7, %v591_v63 }
  0xd7   : > { %v1076_v14 = vpop.eup %1075  ;;  %v821_v15 = vmul.f32 1.442695, %v725_v10  ;;  %v664_v16 = vmul.f32 %v1267_v1, %v594_v11 }
  0xd8   : > { %v663_v17 = vmul.f32 %v1267_v1, %v593_v12  ;;  %v1078_v18 = vpop.eup %1077  ;;  %909 = vst.msk [vmem:[%s1291_s25 + $0xd8] sm:$0xff] %vm881_vm0, %v1076_v14  ;;  %v819_v19 = vmul.f32 1.442695, %v724_v13  ;;  %v426_v20 = vpop.permute.xlu1 %425 }
  0xd9   : > { %v421_v21 = vpop.permute.xlu0 %420  ;;  %908 = vst.msk [vmem:[%s1291_s25 + $0xd0] sm:$0xff] %vm881_vm0, %v1078_v18  ;;  %1087 = vpow2.f32 %v821_v15  ;;  %v727_v22 = vmul.f32 %v664_v16, %v594_v11  ;;  %v596_v24 = vsub.f32 %v426_v20, %v1262_v0 }
  0xda   : > { %v726_v23 = vmul.f32 %v663_v17, %v593_v12  ;;  %1089 = vpow2.f32 %v819_v19  ;;  %v595_v25 = vsub.f32 %v421_v21, %v1262_v0 }
  0xdb   : > { %v1080_v26 = vpop.eup %1079  ;;  %v825_v27 = vmul.f32 1.442695, %v727_v22  ;;  %v666_v29 = vmul.f32 %v1267_v1, %v596_v24 }
  0xdc   : > { %v823_v28 = vmul.f32 1.442695, %v726_v23  ;;  %v1082_v30 = vpop.eup %1081  ;;  %911 = vst.msk [vmem:[%s1291_s25 + $0xe8] sm:$0xff] %vm881_vm0, %v1080_v26  ;;  %v665_v31 = vmul.f32 %v1267_v1, %v595_v25  ;;  %v436_v32 = vpop.permute.xlu1 %435 }
  0xdd   : > { %v431_v33 = vpop.permute.xlu0 %430  ;;  %910 = vst.msk [vmem:[%s1291_s25 + $0xe0] sm:$0xff] %vm881_vm0, %v1082_v30  ;;  %1091 = vpow2.f32 %v825_v27  ;;  %v729_v34 = vmul.f32 %v666_v29, %v596_v24  ;;  %v598_v35 = vsub.f32 %v436_v32, %v1262_v0 }
  0xde   : > { %v597_v36 = vsub.f32 %v431_v33, %v1262_v0  ;;  %1093 = vpow2.f32 %v823_v28  ;;  %v728_v37 = vmul.f32 %v665_v31, %v595_v25 }
  0xdf   : > { %v1084_v38 = vpop.eup %1083  ;;  %v829_v39 = vmul.f32 1.442695, %v729_v34  ;;  %v668_v40 = vmul.f32 %v1267_v1, %v598_v35 }
  0xe0   : > { %v667_v41 = vmul.f32 %v1267_v1, %v597_v36  ;;  %v1086_v42 = vpop.eup %1085  ;;  %913 = vst.msk [vmem:[%s1291_s25 + $0xf8] sm:$0xff] %vm881_vm0, %v1084_v38  ;;  %v827_v43 = vmul.f32 1.442695, %v728_v37  ;;  %v446_v44 = vpop.permute.xlu1 %445 }
  0xe1   : > { %v441_v45 = vpop.permute.xlu0 %440  ;;  %912 = vst.msk [vmem:[%s1291_s25 + $0xf0] sm:$0xff] %vm881_vm0, %v1086_v42  ;;  %1095 = vpow2.f32 %v829_v39  ;;  %v731_v46 = vmul.f32 %v668_v40, %v598_v35  ;;  %v600_v48 = vsub.f32 %v446_v44, %v1262_v0 }
  0xe2   : > { %v730_v47 = vmul.f32 %v667_v41, %v597_v36  ;;  %1097 = vpow2.f32 %v827_v43  ;;  %v599_v49 = vsub.f32 %v441_v45, %v1262_v0 }
  0xe3   : > { %v1088_v50 = vpop.eup %1087  ;;  %v833_v51 = vmul.f32 1.442695, %v731_v46  ;;  %v670_v53 = vmul.f32 %v1267_v1, %v600_v48 }
  0xe4   : > { %v831_v52 = vmul.f32 1.442695, %v730_v47  ;;  %v1090_v54 = vpop.eup %1089  ;;  %915 = vst.msk [vmem:[%s1291_s25 + $0x108] sm:$0xff] %vm881_vm0, %v1088_v50  ;;  %v669_v55 = vmul.f32 %v1267_v1, %v599_v49  ;;  %v456_v56 = vpop.permute.xlu1 %455 }
  0xe5   : > { %v451_v57 = vpop.permute.xlu0 %450  ;;  %914 = vst.msk [vmem:[%s1291_s25 + $0x100] sm:$0xff] %vm881_vm0, %v1090_v54  ;;  %1099 = vpow2.f32 %v833_v51  ;;  %v733_v58 = vmul.f32 %v670_v53, %v600_v48  ;;  %v602_v59 = vsub.f32 %v456_v56, %v1262_v0 }
  0xe6   : > { %v601_v60 = vsub.f32 %v451_v57, %v1262_v0  ;;  %1101 = vpow2.f32 %v831_v52  ;;  %v732_v61 = vmul.f32 %v669_v55, %v599_v49 }
  0xe7   : > { %v1092_v62 = vpop.eup %1091  ;;  %v837_v63 = vmul.f32 1.442695, %v733_v58  ;;  %v672_v2 = vmul.f32 %v1267_v1, %v602_v59 }
  0xe8   : > { %v671_v3 = vmul.f32 %v1267_v1, %v601_v60  ;;  %v1094_v4 = vpop.eup %1093  ;;  %917 = vst.msk [vmem:[%s1291_s25 + $0x118] sm:$0xff] %vm881_vm0, %v1092_v62  ;;  %v835_v5 = vmul.f32 1.442695, %v732_v61  ;;  %v466_v6 = vpop.permute.xlu1 %465 }
  0xe9   : > { %v461_v7 = vpop.permute.xlu0 %460  ;;  %916 = vst.msk [vmem:[%s1291_s25 + $0x110] sm:$0xff] %vm881_vm0, %v1094_v4  ;;  %1103 = vpow2.f32 %v837_v63  ;;  %v735_v8 = vmul.f32 %v672_v2, %v602_v59  ;;  %v604_v10 = vsub.f32 %v466_v6, %v1262_v0 }
  0xea   : > { %v734_v9 = vmul.f32 %v671_v3, %v601_v60  ;;  %1105 = vpow2.f32 %v835_v5  ;;  %v603_v11 = vsub.f32 %v461_v7, %v1262_v0 }
  0xeb   : > { %v1096_v12 = vpop.eup %1095  ;;  %v841_v13 = vmul.f32 1.442695, %v735_v8  ;;  %v674_v15 = vmul.f32 %v1267_v1, %v604_v10 }
  0xec   : > { %v839_v14 = vmul.f32 1.442695, %v734_v9  ;;  %v1098_v16 = vpop.eup %1097  ;;  %919 = vst.msk [vmem:[%s1291_s25 + $0x128] sm:$0xff] %vm881_vm0, %v1096_v12  ;;  %v673_v17 = vmul.f32 %v1267_v1, %v603_v11  ;;  %v476_v18 = vpop.permute.xlu1 %475 }
  0xed   : > { %v471_v19 = vpop.permute.xlu0 %470  ;;  %918 = vst.msk [vmem:[%s1291_s25 + $0x120] sm:$0xff] %vm881_vm0, %v1098_v16  ;;  %1107 = vpow2.f32 %v841_v13  ;;  %v737_v20 = vmul.f32 %v674_v15, %v604_v10  ;;  %v606_v21 = vsub.f32 %v476_v18, %v1262_v0 }
  0xee   : > { %v605_v22 = vsub.f32 %v471_v19, %v1262_v0  ;;  %1109 = vpow2.f32 %v839_v14  ;;  %v736_v23 = vmul.f32 %v673_v17, %v603_v11 }
  0xef   : > { %v1100_v24 = vpop.eup %1099  ;;  %v845_v25 = vmul.f32 1.442695, %v737_v20  ;;  %v676_v26 = vmul.f32 %v1267_v1, %v606_v21 }
  0xf0   : > { %v675_v27 = vmul.f32 %v1267_v1, %v605_v22  ;;  %v1102_v28 = vpop.eup %1101  ;;  %921 = vst.msk [vmem:[%s1291_s25 + $0x138] sm:$0xff] %vm881_vm0, %v1100_v24  ;;  %v843_v29 = vmul.f32 1.442695, %v736_v23  ;;  %v486_v30 = vpop.permute.xlu1 %485 }
  0xf1   : > { %v481_v31 = vpop.permute.xlu0 %480  ;;  %920 = vst.msk [vmem:[%s1291_s25 + $0x130] sm:$0xff] %vm881_vm0, %v1102_v28  ;;  %1111 = vpow2.f32 %v845_v25  ;;  %v739_v32 = vmul.f32 %v676_v26, %v606_v21  ;;  %v608_v34 = vsub.f32 %v486_v30, %v1262_v0 }
  0xf2   : > { %v738_v33 = vmul.f32 %v675_v27, %v605_v22  ;;  %1113 = vpow2.f32 %v843_v29  ;;  %v607_v35 = vsub.f32 %v481_v31, %v1262_v0 }
  0xf3   : > { %v1104_v36 = vpop.eup %1103  ;;  %v849_v37 = vmul.f32 1.442695, %v739_v32  ;;  %v678_v39 = vmul.f32 %v1267_v1, %v608_v34 }
  0xf4   : > { %v847_v38 = vmul.f32 1.442695, %v738_v33  ;;  %v1106_v40 = vpop.eup %1105  ;;  %923 = vst.msk [vmem:[%s1291_s25 + $0x148] sm:$0xff] %vm881_vm0, %v1104_v36  ;;  %v677_v41 = vmul.f32 %v1267_v1, %v607_v35  ;;  %v496_v42 = vpop.permute.xlu1 %495 }
  0xf5   : > { %v491_v43 = vpop.permute.xlu0 %490  ;;  %922 = vst.msk [vmem:[%s1291_s25 + $0x140] sm:$0xff] %vm881_vm0, %v1106_v40  ;;  %1115 = vpow2.f32 %v849_v37  ;;  %v741_v44 = vmul.f32 %v678_v39, %v608_v34  ;;  %v610_v45 = vsub.f32 %v496_v42, %v1262_v0 }
  0xf6   : > { %v609_v46 = vsub.f32 %v491_v43, %v1262_v0  ;;  %1117 = vpow2.f32 %v847_v38  ;;  %v740_v47 = vmul.f32 %v677_v41, %v607_v35 }
  0xf7   : > { %v1108_v48 = vpop.eup %1107  ;;  %v853_v49 = vmul.f32 1.442695, %v741_v44  ;;  %v680_v50 = vmul.f32 %v1267_v1, %v610_v45 }
  0xf8   : > { %v679_v51 = vmul.f32 %v1267_v1, %v609_v46  ;;  %v1110_v52 = vpop.eup %1109  ;;  %925 = vst.msk [vmem:[%s1291_s25 + $0x158] sm:$0xff] %vm881_vm0, %v1108_v48  ;;  %v851_v53 = vmul.f32 1.442695, %v740_v47  ;;  %v506_v54 = vpop.permute.xlu1 %505 }
  0xf9   : > { %v501_v55 = vpop.permute.xlu0 %500  ;;  %924 = vst.msk [vmem:[%s1291_s25 + $0x150] sm:$0xff] %vm881_vm0, %v1110_v52  ;;  %1119 = vpow2.f32 %v853_v49  ;;  %v743_v56 = vmul.f32 %v680_v50, %v610_v45  ;;  %v612_v58 = vsub.f32 %v506_v54, %v1262_v0 }
  0xfa   : > { %v742_v57 = vmul.f32 %v679_v51, %v609_v46  ;;  %1121 = vpow2.f32 %v851_v53  ;;  %v611_v59 = vsub.f32 %v501_v55, %v1262_v0 }
  0xfb   : > { %v1112_v60 = vpop.eup %1111  ;;  %v857_v61 = vmul.f32 1.442695, %v743_v56  ;;  %v682_v63 = vmul.f32 %v1267_v1, %v612_v58 }
  0xfc   : > { %v855_v62 = vmul.f32 1.442695, %v742_v57  ;;  %v1114_v2 = vpop.eup %1113  ;;  %927 = vst.msk [vmem:[%s1291_s25 + $0x168] sm:$0xff] %vm881_vm0, %v1112_v60  ;;  %v681_v3 = vmul.f32 %v1267_v1, %v611_v59  ;;  %v516_v4 = vpop.permute.xlu1 %515 }
  0xfd   : > { %v511_v5 = vpop.permute.xlu0 %510  ;;  %926 = vst.msk [vmem:[%s1291_s25 + $0x160] sm:$0xff] %vm881_vm0, %v1114_v2  ;;  %1123 = vpow2.f32 %v857_v61  ;;  %v745_v6 = vmul.f32 %v682_v63, %v612_v58  ;;  %v614_v7 = vsub.f32 %v516_v4, %v1262_v0 }
  0xfe   : > { %v613_v8 = vsub.f32 %v511_v5, %v1262_v0  ;;  %1125 = vpow2.f32 %v855_v62  ;;  %v744_v9 = vmul.f32 %v681_v3, %v611_v59 }
  0xff   : > { %v1116_v10 = vpop.eup %1115  ;;  %v861_v11 = vmul.f32 1.442695, %v745_v6  ;;  %v684_v12 = vmul.f32 %v1267_v1, %v614_v7 }
 0x100   : > { %v683_v13 = vmul.f32 %v1267_v1, %v613_v8  ;;  %v1118_v14 = vpop.eup %1117  ;;  %929 = vst.msk [vmem:[%s1291_s25 + $0x178] sm:$0xff] %vm881_vm0, %v1116_v10  ;;  %v859_v15 = vmul.f32 1.442695, %v744_v9  ;;  %v526_v16 = vpop.permute.xlu1 %525 }
 0x101   : > { %v521_v17 = vpop.permute.xlu0 %520  ;;  %928 = vst.msk [vmem:[%s1291_s25 + $0x170] sm:$0xff] %vm881_vm0, %v1118_v14  ;;  %1127 = vpow2.f32 %v861_v11  ;;  %v747_v18 = vmul.f32 %v684_v12, %v614_v7  ;;  %v616_v20 = vsub.f32 %v526_v16, %v1262_v0 }
 0x102   : > { %v746_v19 = vmul.f32 %v683_v13, %v613_v8  ;;  %1129 = vpow2.f32 %v859_v15  ;;  %v615_v21 = vsub.f32 %v521_v17, %v1262_v0 }
 0x103   : > { %v1120_v22 = vpop.eup %1119  ;;  %v865_v23 = vmul.f32 1.442695, %v747_v18  ;;  %v686_v25 = vmul.f32 %v1267_v1, %v616_v20 }
 0x104   : > { %v863_v24 = vmul.f32 1.442695, %v746_v19  ;;  %v1122_v26 = vpop.eup %1121  ;;  %931 = vst.msk [vmem:[%s1291_s25 + $0x188] sm:$0xff] %vm881_vm0, %v1120_v22  ;;  %v685_v27 = vmul.f32 %v1267_v1, %v615_v21  ;;  %v536_v28 = vpop.permute.xlu1 %535 }
 0x105   : > { %v531_v29 = vpop.permute.xlu0 %530  ;;  %930 = vst.msk [vmem:[%s1291_s25 + $0x180] sm:$0xff] %vm881_vm0, %v1122_v26  ;;  %1131 = vpow2.f32 %v865_v23  ;;  %v749_v30 = vmul.f32 %v686_v25, %v616_v20  ;;  %v618_v31 = vsub.f32 %v536_v28, %v1262_v0 }
 0x106   : > { %v617_v32 = vsub.f32 %v531_v29, %v1262_v0  ;;  %1133 = vpow2.f32 %v863_v24  ;;  %v748_v33 = vmul.f32 %v685_v27, %v615_v21 }
 0x107   : > { %v1124_v34 = vpop.eup %1123  ;;  %v869_v35 = vmul.f32 1.442695, %v749_v30  ;;  %v688_v36 = vmul.f32 %v1267_v1, %v618_v31 }
 0x108   : > { %v687_v37 = vmul.f32 %v1267_v1, %v617_v32  ;;  %v1126_v38 = vpop.eup %1125  ;;  %933 = vst.msk [vmem:[%s1291_s25 + $0x198] sm:$0xff] %vm881_vm0, %v1124_v34  ;;  %v867_v39 = vmul.f32 1.442695, %v748_v33  ;;  %v546_v40 = vpop.permute.xlu1 %545 }
 0x109   : > { %v541_v41 = vpop.permute.xlu0 %540  ;;  %932 = vst.msk [vmem:[%s1291_s25 + $0x190] sm:$0xff] %vm881_vm0, %v1126_v38  ;;  %1135 = vpow2.f32 %v869_v35  ;;  %v751_v42 = vmul.f32 %v688_v36, %v618_v31  ;;  %v620_v44 = vsub.f32 %v546_v40, %v1262_v0 }
 0x10a   : > { %v750_v43 = vmul.f32 %v687_v37, %v617_v32  ;;  %1137 = vpow2.f32 %v867_v39  ;;  %v619_v45 = vsub.f32 %v541_v41, %v1262_v0 }
 0x10b   : > { %v1128_v46 = vpop.eup %1127  ;;  %v873_v47 = vmul.f32 1.442695, %v751_v42  ;;  %v690_v49 = vmul.f32 %v1267_v1, %v620_v44 }
 0x10c   : > { %v871_v48 = vmul.f32 1.442695, %v750_v43  ;;  %v1130_v50 = vpop.eup %1129  ;;  %935 = vst.msk [vmem:[%s1291_s25 + $0x1a8] sm:$0xff] %vm881_vm0, %v1128_v46  ;;  %v689_v51 = vmul.f32 %v1267_v1, %v619_v45 }
 0x10d   : > { %v551_v52 = vpop.permute.xlu0 %550  ;;  %934 = vst.msk [vmem:[%s1291_s25 + $0x1a0] sm:$0xff] %vm881_vm0, %v1130_v50  ;;  %1139 = vpow2.f32 %v873_v47  ;;  %v753_v53 = vmul.f32 %v690_v49, %v620_v44 }
 0x10e   : > { %v621_v54 = vsub.f32 %v551_v52, %v1262_v0  ;;  %1141 = vpow2.f32 %v871_v48  ;;  %v752_v55 = vmul.f32 %v689_v51, %v619_v45 }
 0x10f   : > { %v1132_v56 = vpop.eup %1131  ;;  %v877_v57 = vmul.f32 1.442695, %v753_v53 }
 0x110   : > { %v691_v58 = vmul.f32 %v1267_v1, %v621_v54  ;;  %v1134_v59 = vpop.eup %1133  ;;  %937 = vst.msk [vmem:[%s1291_s25 + $0x1b8] sm:$0xff] %vm881_vm0, %v1132_v56  ;;  %v875_v60 = vmul.f32 1.442695, %v752_v55 }
 0x111   : > { %936 = vst.msk [vmem:[%s1291_s25 + $0x1b0] sm:$0xff] %vm881_vm0, %v1134_v59  ;;  %1143 = vpow2.f32 %v877_v57 }
 0x112   : > { %v754_v0 = vmul.f32 %v691_v58, %v621_v54  ;;  %1145 = vpow2.f32 %v875_v60 }
 0x113   : > { %v1136_v61 = vpop.eup %1135 }
 0x114   : > { %v879_v62 = vmul.f32 1.442695, %v754_v0  ;;  %v1138_v63 = vpop.eup %1137  ;;  %939 = vst.msk [vmem:[%s1291_s25 + $0x1c8] sm:$0xff] %vm881_vm0, %v1136_v61 }
 0x115   : > { %938 = vst.msk [vmem:[%s1291_s25 + $0x1c0] sm:$0xff] %vm881_vm0, %v1138_v63 }
 0x116   : > { %1147 = vpow2.f32 %v879_v62 }
 0x117   : > { %v1140_v1 = vpop.eup %1139 }
 0x118   : > { %v1142_v2 = vpop.eup %1141  ;;  %941 = vst.msk [vmem:[%s1291_s25 + $0x1d8] sm:$0xff] %vm881_vm0, %v1140_v1 }
 0x119   : > { %940 = vst.msk [vmem:[%s1291_s25 + $0x1d0] sm:$0xff] %vm881_vm0, %v1142_v2 }
 0x11b   : > { %v1144_v3 = vpop.eup %1143 }
 0x11c   : > { %v1146_v4 = vpop.eup %1145  ;;  %943 = vst.msk [vmem:[%s1291_s25 + $0x1e8] sm:$0xff] %vm881_vm0, %v1144_v3 }
 0x11d   : > { %942 = vst.msk [vmem:[%s1291_s25 + $0x1e0] sm:$0xff] %vm881_vm0, %v1146_v4 }
 0x120   : > { %v1148_v5 = vpop.eup %1147 }
 0x121   : > { %944 = vst.msk [vmem:[%s1291_s25 + $0x1f0] sm:$0xff] %vm881_vm0, %v1148_v5 }
 0x122 PF: > { %s13_s12 = sadd.s32 1, %s1155_s12  }
 0x123   : > { %p10_p4 = scmp.ge.s32.totalorder %s13_s12, 4  }
 0x125   :  { %12 = sbr.rel (!%p10_p4) target bundleno = 1 (0x1), region = 62 }

</bundles_post_ra>
